<compile_context>
chip_gen: v7x
topology: tpu7x:2x2x1
jax: 0.10.0
libtpu: 0.0.40
codegen_flags: <defaults>
</compile_context>

<pallas_src>
import numpy as np
import jax
import jax.numpy as jnp
from jax.experimental import pallas as pl
from jax.experimental.pallas import tpu as pltpu


# ---------------------------------------------------------------------------
# Topology / weight construction (pure Python glue, mirrors nn.Module.__init__)
# ---------------------------------------------------------------------------
def build_skeleton_pool_weight(edges, pooling_mode, channels_per_edge, last_pool=False):
    if pooling_mode != 'mean':
        raise Exception('Unimplemented pooling mode in matrix_implementation')

    edge_num = len(edges)
    seq_list = []
    pooling_list = []
    new_edges = []

    degree = [0] * 100
    for edge in edges:
        degree[edge[0]] += 1
        degree[edge[1]] += 1

    def find_seq(j, seq):
        if degree[j] > 2 and j != 0:
            seq_list.append(seq)
            seq = []
        if degree[j] == 1:
            seq_list.append(seq)
            return
        for idx, edge in enumerate(edges):
            if edge[0] == j:
                find_seq(edge[1], seq + [idx])

    find_seq(0, [])

    for seq in seq_list:
        if last_pool:
            pooling_list.append(seq)
            continue
        if len(seq) % 2 == 1:
            pooling_list.append([seq[0]])
            new_edges.append(edges[seq[0]])
            seq = seq[1:]
        for i in range(0, len(seq), 2):
            pooling_list.append([seq[i], seq[i + 1]])
            new_edges.append([edges[seq[i]][0], edges[seq[i + 1]][1]])

    weight = np.zeros(
        (len(pooling_list) * channels_per_edge, edge_num * channels_per_edge),
        dtype=np.float32,
    )
    for i, pair in enumerate(pooling_list):
        for j in pair:
            for c in range(channels_per_edge):
                weight[i * channels_per_edge + c, j * channels_per_edge + c] = 1.0 / len(pair)
    return jnp.asarray(weight), pooling_list, new_edges


# ---------------------------------------------------------------------------
# Pallas kernel: lane-dense 2D matmul  out = W @ X  on one (C_in, tN) slab.
# Used by both the native-NCT path (batch dim squeezed) and the small-T
# batch-folded path.
# ---------------------------------------------------------------------------
def _skeleton_pool_kernel(w_ref, x_ref, o_ref):
    # w_ref: (C_out, C_in), x_ref: (C_in, tN), o_ref: (C_out, tN)
    o_ref[...] = jnp.dot(
        w_ref[...], x_ref[...], preferred_element_type=jnp.float32
    ).astype(o_ref.dtype)


def skeleton_pool_forward(weight, x, *, lane_tile=4096):
    """weight: (C_out, C_in), x: (B, C_in, T) -> (B, C_out, T).

    lane_tile: lane-axis (T) tile width, multiple of 128.  Tiles are always
    formed with cdiv; ragged last tiles are masked on store.
    """
    C_out, C_in = weight.shape
    B, C_in_x, T = x.shape
    assert C_in == C_in_x
    assert lane_tile % 128 == 0
    out_dtype = x.dtype
    itemsize = jnp.dtype(x.dtype).itemsize

    # True HBM traffic of the un-transposed layout (mem-bound op; helps XLA
    # overlap neighbors with this call).
    cost = pl.CostEstimate(
        flops=2 * C_out * C_in * B * T,
        transcendentals=0,
        bytes_accessed=(B * C_in * T + B * C_out * T + C_out * C_in) * itemsize,
    )

    compiler_params = pltpu.CompilerParams(
        dimension_semantics=("parallel", "parallel"),
        # Explicit, generation-safe VMEM budget; per-step tiles here are
        # ~1-2 MiB so this is comfortable even on v7x (64 MiB physical).
        vmem_limit_bytes=32 * 1024 * 1024,
    )

    if T >= 128:
        # -------- Native NCT layout: grid = (batch, lane tiles of T) --------
        # No wrapper transposes -> no extra HBM passes.  Batch dim squeezed
        # out of the kernel refs (block size 1 along batch).
        tN = T if T <= lane_tile else lane_tile
        nT = pl.cdiv(T, tN)
        out = pl.pallas_call(
            _skeleton_pool_kernel,
            out_shape=jax.ShapeDtypeStruct((B, C_out, T), out_dtype),
            grid_spec=pltpu.PrefetchScalarGridSpec(
                num_scalar_prefetch=0,
                grid=(B, nT),
                in_specs=[
                    # tiny weight matrix, resident for every grid step
                    pl.BlockSpec((C_out, C_in), lambda b, n: (0, 0)),
                    # one lane-dense slab of this batch element's activations
                    pl.BlockSpec((None, C_in, tN), lambda b, n: (b, 0, n)),
                ],
                out_specs=pl.BlockSpec((None, C_out, tN), lambda b, n: (b, 0, n)),
            ),
            compiler_params=compiler_params,
            cost_estimate=cost,
        )(weight, x)
        return out

    # -------- Small-T path (T < 128): fold batch into the lane axis ---------
    # Keeps output stores lane-dense instead of masked T-wide partial stores
    # (biggest win on v5e's single vector-store slot).  The transpose cost is
    # negligible at these sizes.
    N = B * T
    x2 = jnp.transpose(x, (1, 0, 2)).reshape(C_in, N)
    tN = N if N <= lane_tile else lane_tile
    nN = pl.cdiv(N, tN)
    out2 = pl.pallas_call(
        _skeleton_pool_kernel,
        out_shape=jax.ShapeDtypeStruct((C_out, N), out_dtype),
        grid_spec=pltpu.PrefetchScalarGridSpec(
            num_scalar_prefetch=0,
            grid=(nN,),
            in_specs=[
                pl.BlockSpec((C_out, C_in), lambda n: (0, 0)),
                pl.BlockSpec((C_in, tN), lambda n: (0, n)),
            ],
            out_specs=pl.BlockSpec((C_out, tN), lambda n: (0, n)),
        ),
        compiler_params=pltpu.CompilerParams(
            dimension_semantics=("parallel",),
            vmem_limit_bytes=32 * 1024 * 1024,
        ),
        cost_estimate=cost,
    )(weight, x2)
    # (C_out, B*T) -> (B, C_out, T)
    return out2.reshape(C_out, B, T).transpose(1, 0, 2)


# ---------------------------------------------------------------------------
# Demo / correctness check
# ---------------------------------------------------------------------------
if __name__ == "__main__":
    # Small synthetic skeleton (joint 0 = root with 3 chains hanging off it).
    edges = [
        [0, 1], [1, 2], [2, 3], [3, 4],          # chain of 4 edges
        [0, 5], [5, 6], [6, 7],                  # chain of 3 edges
        [0, 8], [8, 9], [9, 10], [10, 11],       # chain of 4 edges
    ]
    channels_per_edge = 4
    weight, pooling_list, new_edges = build_skeleton_pool_weight(
        edges, pooling_mode='mean', channels_per_edge=channels_per_edge,
        last_pool=False,
    )
    C_in = len(edges) * channels_per_edge          # 44
    C_out = len(pooling_list) * channels_per_edge  # 24
    w_np = np.asarray(weight)

    key = jax.random.PRNGKey(0)
    k1, k2, k3 = jax.random.split(key, 3)

    # --- Check 1: small T (batch-folded, lane-dense path) --------------------
    B, T = 2, 16
    x_small = jax.random.normal(k1, (B, C_in, T), dtype=jnp.float32)
    out_small = jax.block_until_ready(skeleton_pool_forward(weight, x_small))
    ref_small = np.einsum('oc,bct->bot', w_np, np.asarray(x_small))
    assert out_small.shape == (B, C_out, T)
    np.testing.assert_allclose(np.asarray(out_small), ref_small, rtol=1e-5, atol=1e-5)

    # --- Check 2: T >= 128 (native NCT layout, 2-D grid, no transposes) ------
    B2, T2 = 2, 256
    x_nct = jax.random.normal(k2, (B2, C_in, T2), dtype=jnp.float32)
    out_nct = jax.block_until_ready(skeleton_pool_forward(weight, x_nct))
    ref_nct = np.einsum('oc,bct->bot', w_np, np.asarray(x_nct))
    assert out_nct.shape == (B2, C_out, T2)
    np.testing.assert_allclose(np.asarray(out_nct), ref_nct, rtol=1e-5, atol=1e-5)

    # --- Check 3: ragged lane tiling (T not a multiple of the lane tile) -----
    B3, T3 = 2, 200
    x_rag = jax.random.normal(k3, (B3, C_in, T3), dtype=jnp.float32)
    out_rag = jax.block_until_ready(skeleton_pool_forward(weight, x_rag, lane_tile=128))
    ref_rag = np.einsum('oc,bct->bot', w_np, np.asarray(x_rag))
    assert out_rag.shape == (B3, C_out, T3)
    np.testing.assert_allclose(np.asarray(out_rag), ref_rag, rtol=1e-5, atol=1e-5)

    print("KERNEL_OK")
</pallas_src>

<mosaic_0001>
module attributes {stable_mosaic.version = 11 : i64} {
  func.func @_skeleton_pool_kernel(%arg0: i32, %arg1: memref<24x44xf32, #tpu.memory_space<vmem>>, %arg2: memref<44x32xf32, #tpu.memory_space<vmem>>, %arg3: memref<24x32xf32, #tpu.memory_space<vmem>>) attributes {dimension_semantics = [#tpu.dimension_semantics<parallel>], iteration_bounds = array<i64: 1>, scalar_prefetch = 0 : i64, scratch_operands = 0 : i64, tpu.core_type = #tpu.core_type<tc>, window_params = [{pipeline_mode = #tpu.pipeline_mode<synchronous>, transform_indices = @transform_0, window_bounds = array<i64: 24, 44>}, {transform_indices = @transform_1, window_bounds = array<i64: 44, 32>}, {transform_indices = @transform_2, window_bounds = array<i64: 24, 32>}]} {
    %c0 = arith.constant 0 : index
    %c0_0 = arith.constant 0 : index
    %0 = vector.load %arg1[%c0, %c0_0] : memref<24x44xf32, #tpu.memory_space<vmem>>, vector<24x44xf32>
    %c0_1 = arith.constant 0 : index
    %c0_2 = arith.constant 0 : index
    %1 = vector.load %arg2[%c0_1, %c0_2] : memref<44x32xf32, #tpu.memory_space<vmem>>, vector<44x32xf32>
    %cst = arith.constant dense<0.000000e+00> : vector<24x32xf32>
    %2 = tpu.matmul %0, %1, %cst {dimension_numbers = #tpu.dot_dimension_numbers<[1], [0], [0], [1], [0, 0, 1, 1], [], []>} : vector<24x44xf32>, vector<44x32xf32>, vector<24x32xf32> -> vector<24x32xf32>
    %c0_3 = arith.constant 0 : index
    %c0_4 = arith.constant 0 : index
    %3 = vector.load %arg3[%c0_3, %c0_4] : memref<24x32xf32, #tpu.memory_space<vmem>>, vector<24x32xf32>
    tpu.vector_store %arg3[%c0_3, %c0_4], %2 {strides = array<i32>} : memref<24x32xf32, #tpu.memory_space<vmem>>, vector<24x32xf32>,
    return
  }
  func.func @transform_0(%arg0: i32) -> (i32, i32) {
    %c0_i32 = arith.constant 0 : i32
    %c0_i32_0 = arith.constant 0 : i32
    %c0_i32_1 = arith.constant 0 : i32
    return %c0_i32, %c0_i32_0 : i32, i32
  }
  func.func @transform_1(%arg0: i32) -> (i32, i32) {
    %c0_i32 = arith.constant 0 : i32
    %c0_i32_0 = arith.constant 0 : i32
    return %c0_i32, %arg0 : i32, i32
  }
  func.func @transform_2(%arg0: i32) -> (i32, i32) {
    %c0_i32 = arith.constant 0 : i32
    %c0_i32_0 = arith.constant 0 : i32
    return %c0_i32, %arg0 : i32, i32
  }
}

</mosaic_0001>

<bundles_post_ra>
// kernel: tpu_custom_call.1
= control target key start
LH: loop header
LB: loop body
LE: loop exit
PB: predicated region body
PF: predicated region fallthrough
CT: control target
= control target key end

     0   :  { %v216_v3 = vmov 0.0|0.0   ;;  %vm217_vm0 = vmmov 0   ;;  %v218_v6 = vmov 0.0   ;;  %s280_s0 = inlined_call_operand.vmem [shape: f32[24,44], index: 0, kind: input, shape index: {}]   ;;  %s281_s1 = inlined_call_operand.vmem [shape: f32[44,32], index: 1, kind: input, shape index: {}]   ;;  %s282_s2 = inlined_call_operand.hbm [shape: f32[24,32], index: 2, kind: output, shape index: {}]  }
   0x1   :  { %v15_v0 = vld [vmem:[%s281_s1] sm:$0xff]  ;;  %v16_v1 = vld [vmem:[%s281_s1 + $0x8] sm:$0xff]  ;;  %v17_v2 = vld [vmem:[%s281_s1 + $0x10] sm:$0xff]  ;;  %179 = vmatprep.subr.bf16.mxu1 %v216_v3  ;;  %169 = vmatprep.subr.bf16.mxu0 %v216_v3 }
   0x2   :  { %v170_v4 = vpack.c.bf16 %v16_v1, %v15_v0  ;;  %v18_v5 = vld [vmem:[%s281_s1 + $0x18] sm:$0xff]  ;;  %163 = vmatprep.mubr.msk.f32.mxu1 %vm217_vm0, %v218_v6  ;;  %160 = vmatprep.mubr.msk.f32.mxu0 %vm217_vm0, %v218_v6 }
   0x3   :  { %v173_v7 = vpack.c.bf16 %v18_v5, %v17_v2 }
   0x4   :  { %182 = vmatpush3.bf16.msra.mxu1 %v170_v4  ;;  %171 = vmatpush3.bf16.msra.mxu0 %v170_v4 }
   0x5   :  { %7 = vsyncpa [#allocation3], 0  ;;  %180 = vmatprep.subr.bf16.mxu1 %v216_v3  ;;  %172 = vmatprep.subr.bf16.mxu0 %v216_v3  ;;  %v19_v8 = vld [vmem:[%s281_s1 + $0x20] sm:$0xff]  ;;  %v20_v9 = vld [vmem:[%s281_s1 + $0x28] sm:$0xf]  ;;  %vm31_vm1 = vcmask 1043456  }
   0x6   :  { %v176_v10 = vpack.c.bf16 %v20_v9, %v19_v8  ;;  %vm219_vm2 = vmmov 1   ;;  %v13_v11 = vld [vmem:[%s280_s0 + $0x8] sm:$0xff]  ;;  %vm21_vm4 = vcmask 359424   ;;  %v12_v12 = vld [vmem:[%s280_s0] sm:$0xff]  ;;  %v14_v13 = vld [vmem:[%s280_s0 + $0x10] sm:$0xff]  ;;  %vm115_vm5 = vcmask 261120  }
   0x7   :  { %vm177_vm3 = vmpackc.low %vm31_vm1, %vm219_vm2  ;;  %s220_s26 = smov [#allocation2]  }
   0x8   :  { %183 = vmatpush3.bf16.msra.mxu1 %v173_v7  ;;  %174 = vmatpush3.bf16.msra.mxu0 %v173_v7  ;;  %s124_s27 = sshll.u32 %s220_s26, 4  ;;  %s125_s27 = int_to_ptr.vmem [resolvable:$true] %s124_s27 }
   0x9   :  { %181 = vmatprep.subr.bf16.mxu1 %v216_v3  ;;  %175 = vmatprep.subr.bf16.mxu0 %v216_v3  ;;  %s192_s28 = scalar_lea.vmem %s125_s27, 384  ;;  %p197_p1 = scmp.lt.s32.totalorder %s125_s27, %s125_s27 }
   0xa   :  { %p193_p0 = scmp.ne.s32.totalorder %s125_s27, %s192_s28  ;;  %p198_p2 = scmp.lt.s32.totalorder %s192_s28, %s192_s28 }
   0xc   :  { %184 = vmatpush3.bf16.msk.msra.mxu1 %vm177_vm3, %v176_v10  ;;  %178 = vmatpush3.bf16.msk.msra.mxu0 %vm177_vm3, %v176_v10  ;;  %p199_p3 = por %p198_p2, %p197_p1 }
   0xe   :  { %p200_p4 = pnand %p199_p3, %p193_p0 }
   0xf   :  { %164 = vmatmul.mubr.msk.f32.vlgmr.msra.gmra.mrb[0].mxu1 %vm21_vm4, %v13_v11  ;;  %161 = vmatmul.mubr.msk.f32.vlgmr.msra.gmra.mrb[0].mxu0 %vm21_vm4, %v12_v12 }
  0x10   :  { %166 = vmatprep.mubr.msk.f32.mxu1 %vm217_vm0, %v218_v6 }
  0x13   :  { %167 = vmatmul.mubr.msk.f32.gmra.mrb[2].mxu1 %vm21_vm4, %v14_v13 }
  0xe2   :  { %v106_v14 = vpop.f32.mrb[0].mxu1  ;;  %v101_v15 = vpop.f32.mrb[0].mxu0 }
  0xe3   :  { %117 = vst.msk [vmem:[#allocation2 + $0x8] sm:$0xff] %vm115_vm5, %v106_v14  ;;  %v165_v16 = vpop.f32.mrb[1].mxu1  ;;  %116 = vst.msk [vmem:[#allocation2] sm:$0xff] %vm115_vm5, %v101_v15  ;;  %v162_v17 = vpop.f32.mrb[1].mxu0 }
  0xe6   :  { %v111_v18 = vpop.f32.mrb[2].mxu1 }
  0xe7   :  { %118 = vst.msk [vmem:[#allocation2 + $0x10] sm:$0xff] %vm115_vm5, %v111_v18  ;;  %v168_v19 = vpop.f32.mrb[3].mxu1 }
  0xe8   :  { %203 = shalt.err (!%p200_p4)
}
  0xe9   :  { %s204_s30 = scalar_lea.hbm %s282_s2, 384 }
  0xea   :  { %p205_p5 = scmp.ne.s32.totalorder %s282_s2, %s204_s30  ;;  %p208_p6 = scmp.lt.u32.totalorder %s204_s30, %s282_s2 }
  0xec   :  { %p210_p7 = pnand %p208_p6, %p205_p5 }
  0xee   :  { %213 = shalt.err (!%p210_p7)
}
  0xef   :  { %s221_s7 = smov 128   ;;  %s222_s8 = smov 8  }
  0xf0   :  { %130 = dma.vmem_to_hbm [thread:$0]  %s125_s27, 384, %s282_s2, [#allocation3], %s221_s7, %s221_s7, %s222_s8  }
  0xf1   :  { %214 = dma.done.wait [#allocation3], 384  }
  0xf2   :  { %215 = vsyncadd [#allocation3], 4294966912 }
  0xf3   :  { %134 = vsyncpa [#allocation3], 1 }

</bundles_post_ra>
